<compile_context>
chip_gen: v7x
topology: tpu7x:2x2x1
jax: 0.10.0
libtpu: 0.0.40
codegen_flags: <defaults>
</compile_context>

<pallas_src>
import functools

import jax
import jax.numpy as jnp
from jax.experimental import pallas as pl
from jax.experimental.pallas import tpu as pltpu

IN_RAW, H1_RAW, H2_RAW, H3_RAW, OUT_RAW = 784, 100, 100, 50, 10
IN_PAD = 896          # 7 * 128  (lane-dense K for the first matmul)
H1_PAD = H2_PAD = H3_PAD = 128
OUT_PAD = 128         # lane-dense output -> unmasked vst
NEG_BIG = -1e30       # bias for padded logit columns (exp() underflows to 0)


def _round_up(x, m):
    return (x + m - 1) // m * m


def linear_net_kernel(x_ref, w1_ref, b1_ref, w2_ref, b2_ref,
                      w3_ref, b3_ref, w4_ref, b4_ref, out_ref):
    # x / weights are bf16; MXU accumulates in f32; biases are f32.
    x = x_ref[...]

    h1 = jnp.dot(x, w1_ref[...], preferred_element_type=jnp.float32) + b1_ref[...]
    h1 = jnp.maximum(h1, 0.0).astype(jnp.bfloat16)

    h2 = jnp.dot(h1, w2_ref[...], preferred_element_type=jnp.float32) + b2_ref[...]
    h2 = jnp.maximum(h2, 0.0).astype(jnp.bfloat16)

    h3 = jnp.dot(h2, w3_ref[...], preferred_element_type=jnp.float32) + b3_ref[...]
    h3 = jnp.maximum(h3, 0.0).astype(jnp.bfloat16)

    # Padded logit columns have zero weight columns and a -1e30 bias, so they
    # contribute exactly 0 to the softmax denominator of the 10 real classes.
    logits = jnp.dot(h3, w4_ref[...], preferred_element_type=jnp.float32) + b4_ref[...]

    # log_softmax along the class dim (max-shifted, f32).
    m = jnp.max(logits, axis=-1, keepdims=True)
    shifted = logits - m
    lse = jnp.log(jnp.sum(jnp.exp(shifted), axis=-1, keepdims=True))
    out_ref[...] = (shifted - lse).astype(out_ref.dtype)


def prepare_params(params):
    """One-time conversion of PyTorch-style params ((out,in) W, (out,) b) into
    kernel layout: transposed to (in,out), zero-padded to lane multiples,
    weights cast to bf16, biases kept f32 as (1, out_pad). Padded logit
    columns of the last layer get a -1e30 bias."""
    (w1, b1), (w2, b2), (w3, b3), (w4, b4) = params

    def prep(w, b, in_pad, out_pad, pad_bias_value=0.0):
        wt = w.T.astype(jnp.float32)                                   # (in, out)
        wt = jnp.pad(wt, ((0, in_pad - wt.shape[0]),
                          (0, out_pad - wt.shape[1])))
        bp = jnp.pad(b.astype(jnp.float32), (0, out_pad - b.shape[0]),
                     constant_values=pad_bias_value)
        return wt.astype(jnp.bfloat16), bp.reshape(1, out_pad)

    return (
        *prep(w1, b1, IN_PAD, H1_PAD),
        *prep(w2, b2, H1_PAD, H2_PAD),
        *prep(w3, b3, H2_PAD, H3_PAD),
        *prep(w4, b4, H3_PAD, OUT_PAD, pad_bias_value=NEG_BIG),
    )


@functools.partial(jax.jit, static_argnames=("block_b",))
def linear_net_forward(x, kernel_params, block_b=1024):
    """x: any shape reshapable to (-1, 784). Returns (B, 10) log-probabilities."""
    x2d = x.reshape(-1, IN_RAW).astype(jnp.bfloat16)
    b = x2d.shape[0]

    # Batch tile: divisible by 8 (sublane), capped so the double-buffered
    # bf16 x-tile + f32 out-tile stay well under the scoped VMEM budget on
    # every generation (v7x included).
    tb = min(block_b, _round_up(b, 8))
    b_pad = _round_up(b, tb)
    xp = jnp.pad(x2d, ((0, b_pad - b), (0, IN_PAD - IN_RAW)))

    def resident(shape):
        # Weights/biases: same block every grid step -> stay VMEM-resident.
        return pl.BlockSpec(shape, lambda i: (0,) * len(shape))

    w1, b1, w2, b2, w3, b3, w4, b4 = kernel_params

    out = pl.pallas_call(
        linear_net_kernel,
        out_shape=jax.ShapeDtypeStruct((b_pad, OUT_PAD), jnp.float32),
        grid=(b_pad // tb,),
        in_specs=[
            pl.BlockSpec((tb, IN_PAD), lambda i: (i, 0)),
            resident(w1.shape), resident(b1.shape),
            resident(w2.shape), resident(b2.shape),
            resident(w3.shape), resident(b3.shape),
            resident(w4.shape), resident(b4.shape),
        ],
        out_specs=pl.BlockSpec((tb, OUT_PAD), lambda i: (i, 0)),
        compiler_params=pltpu.CompilerParams(
            dimension_semantics=("parallel",)),
    )(xp, *kernel_params)

    return out[:b, :OUT_RAW]


def init_params(key):
    """Deterministic init mimicking PyTorch nn.Linear default (uniform ±1/sqrt(fan_in)),
    stored PyTorch-style as ((out_features, in_features), (out_features,))."""
    dims = [(784, 100), (100, 100), (100, 50), (50, 10)]
    params = []
    for fan_in, fan_out in dims:
        key, kw, kb = jax.random.split(key, 3)
        bound = 1.0 / jnp.sqrt(fan_in)
        w = jax.random.uniform(kw, (fan_out, fan_in), jnp.float32, -bound, bound)
        b = jax.random.uniform(kb, (fan_out,), jnp.float32, -bound, bound)
        params.append((w, b))
    return params


def ref_forward(x, params):
    """Pure-JAX f32 reference of the PyTorch module."""
    h = x.reshape(-1, IN_RAW).astype(jnp.float32)
    for i, (w, bi) in enumerate(params):
        h = h @ w.T + bi
        if i < 3:
            h = jnp.maximum(h, 0.0)
    return jax.nn.log_softmax(h, axis=-1)


if __name__ == "__main__":
    key = jax.random.PRNGKey(0)
    key, kx = jax.random.split(key)

    # MNIST-like input: (B, 1, 28, 28) NCHW -> view(-1, 784)
    x = jax.random.normal(kx, (8, 1, 28, 28), jnp.float32)
    params = init_params(key)
    kernel_params = prepare_params(params)   # transpose / pad / cast ONCE

    out = linear_net_forward(x, kernel_params)
    out = jax.block_until_ready(out)

    assert out.shape == (8, 10)
    # log_softmax rows should sum (in prob space) to ~1.
    assert jnp.allclose(jnp.sum(jnp.exp(out), axis=-1), 1.0, atol=1e-3)
    # Matches the f32 reference up to bf16 input/weight rounding.
    ref = ref_forward(x, params)
    assert jnp.allclose(out, ref, atol=0.1), float(jnp.max(jnp.abs(out - ref)))

    print("KERNEL_OK")
</pallas_src>

<mosaic_0001>
module attributes {stable_mosaic.version = 11 : i64} {
  func.func @linear_net_kernel(%arg0: i32, %arg1: memref<8x896xbf16, #tpu.memory_space<vmem>>, %arg2: memref<896x128xbf16, #tpu.memory_space<vmem>>, %arg3: memref<1x128xf32, #tpu.memory_space<vmem>>, %arg4: memref<128x128xbf16, #tpu.memory_space<vmem>>, %arg5: memref<1x128xf32, #tpu.memory_space<vmem>>, %arg6: memref<128x128xbf16, #tpu.memory_space<vmem>>, %arg7: memref<1x128xf32, #tpu.memory_space<vmem>>, %arg8: memref<128x128xbf16, #tpu.memory_space<vmem>>, %arg9: memref<1x128xf32, #tpu.memory_space<vmem>>, %arg10: memref<8x128xf32, #tpu.memory_space<vmem>>) attributes {dimension_semantics = [#tpu.dimension_semantics<parallel>], iteration_bounds = array<i64: 1>, scalar_prefetch = 0 : i64, scratch_operands = 0 : i64, tpu.core_type = #tpu.core_type<tc>, window_params = [{transform_indices = @transform_0, window_bounds = array<i64: 8, 896>}, {pipeline_mode = #tpu.pipeline_mode<synchronous>, transform_indices = @transform_1, window_bounds = array<i64: 896, 128>}, {pipeline_mode = #tpu.pipeline_mode<synchronous>, transform_indices = @transform_2, window_bounds = array<i64: 1, 128>}, {pipeline_mode = #tpu.pipeline_mode<synchronous>, transform_indices = @transform_3, window_bounds = array<i64: 128, 128>}, {pipeline_mode = #tpu.pipeline_mode<synchronous>, transform_indices = @transform_4, window_bounds = array<i64: 1, 128>}, {pipeline_mode = #tpu.pipeline_mode<synchronous>, transform_indices = @transform_5, window_bounds = array<i64: 128, 128>}, {pipeline_mode = #tpu.pipeline_mode<synchronous>, transform_indices = @transform_6, window_bounds = array<i64: 1, 128>}, {pipeline_mode = #tpu.pipeline_mode<synchronous>, transform_indices = @transform_7, window_bounds = array<i64: 128, 128>}, {pipeline_mode = #tpu.pipeline_mode<synchronous>, transform_indices = @transform_8, window_bounds = array<i64: 1, 128>}, {transform_indices = @transform_9, window_bounds = array<i64: 8, 128>}]} {
    %c0 = arith.constant 0 : index
    %c0_0 = arith.constant 0 : index
    %0 = vector.load %arg1[%c0, %c0_0] : memref<8x896xbf16, #tpu.memory_space<vmem>>, vector<8x896xbf16>
    %c0_1 = arith.constant 0 : index
    %c0_2 = arith.constant 0 : index
    %1 = vector.load %arg2[%c0_1, %c0_2] : memref<896x128xbf16, #tpu.memory_space<vmem>>, vector<896x128xbf16>
    %cst = arith.constant dense<0.000000e+00> : vector<8x128xf32>
    %2 = tpu.matmul %0, %1, %cst {dimension_numbers = #tpu.dot_dimension_numbers<[1], [0], [0], [1], [0, 0, 1, 1], [], []>} : vector<8x896xbf16>, vector<896x128xbf16>, vector<8x128xf32> -> vector<8x128xf32>
    %c0_3 = arith.constant 0 : index
    %c0_4 = arith.constant 0 : index
    %3 = vector.load %arg3[%c0_3, %c0_4] : memref<1x128xf32, #tpu.memory_space<vmem>>, vector<1x128xf32>
    %4 = vector.broadcast %3 : vector<1x128xf32> to vector<8x128xf32>
    %5 = arith.addf %2, %4 : vector<8x128xf32>
    %cst_5 = arith.constant 0.000000e+00 : f32
    %6 = vector.broadcast %cst_5 : f32 to vector<8x128xf32>
    %7 = arith.maximumf %5, %6 : vector<8x128xf32>
    %8 = arith.truncf %7 : vector<8x128xf32> to vector<8x128xbf16>
    %c0_6 = arith.constant 0 : index
    %c0_7 = arith.constant 0 : index
    %9 = vector.load %arg4[%c0_6, %c0_7] : memref<128x128xbf16, #tpu.memory_space<vmem>>, vector<128x128xbf16>
    %cst_8 = arith.constant dense<0.000000e+00> : vector<8x128xf32>
    %10 = tpu.matmul %8, %9, %cst_8 {dimension_numbers = #tpu.dot_dimension_numbers<[1], [0], [0], [1], [0, 0, 1, 1], [], []>} : vector<8x128xbf16>, vector<128x128xbf16>, vector<8x128xf32> -> vector<8x128xf32>
    %c0_9 = arith.constant 0 : index
    %c0_10 = arith.constant 0 : index
    %11 = vector.load %arg5[%c0_9, %c0_10] : memref<1x128xf32, #tpu.memory_space<vmem>>, vector<1x128xf32>
    %12 = vector.broadcast %11 : vector<1x128xf32> to vector<8x128xf32>
    %13 = arith.addf %10, %12 : vector<8x128xf32>
    %cst_11 = arith.constant 0.000000e+00 : f32
    %14 = vector.broadcast %cst_11 : f32 to vector<8x128xf32>
    %15 = arith.maximumf %13, %14 : vector<8x128xf32>
    %16 = arith.truncf %15 : vector<8x128xf32> to vector<8x128xbf16>
    %c0_12 = arith.constant 0 : index
    %c0_13 = arith.constant 0 : index
    %17 = vector.load %arg6[%c0_12, %c0_13] : memref<128x128xbf16, #tpu.memory_space<vmem>>, vector<128x128xbf16>
    %cst_14 = arith.constant dense<0.000000e+00> : vector<8x128xf32>
    %18 = tpu.matmul %16, %17, %cst_14 {dimension_numbers = #tpu.dot_dimension_numbers<[1], [0], [0], [1], [0, 0, 1, 1], [], []>} : vector<8x128xbf16>, vector<128x128xbf16>, vector<8x128xf32> -> vector<8x128xf32>
    %c0_15 = arith.constant 0 : index
    %c0_16 = arith.constant 0 : index
    %19 = vector.load %arg7[%c0_15, %c0_16] : memref<1x128xf32, #tpu.memory_space<vmem>>, vector<1x128xf32>
    %20 = vector.broadcast %19 : vector<1x128xf32> to vector<8x128xf32>
    %21 = arith.addf %18, %20 : vector<8x128xf32>
    %cst_17 = arith.constant 0.000000e+00 : f32
    %22 = vector.broadcast %cst_17 : f32 to vector<8x128xf32>
    %23 = arith.maximumf %21, %22 : vector<8x128xf32>
    %24 = arith.truncf %23 : vector<8x128xf32> to vector<8x128xbf16>
    %c0_18 = arith.constant 0 : index
    %c0_19 = arith.constant 0 : index
    %25 = vector.load %arg8[%c0_18, %c0_19] : memref<128x128xbf16, #tpu.memory_space<vmem>>, vector<128x128xbf16>
    %cst_20 = arith.constant dense<0.000000e+00> : vector<8x128xf32>
    %26 = tpu.matmul %24, %25, %cst_20 {dimension_numbers = #tpu.dot_dimension_numbers<[1], [0], [0], [1], [0, 0, 1, 1], [], []>} : vector<8x128xbf16>, vector<128x128xbf16>, vector<8x128xf32> -> vector<8x128xf32>
    %c0_21 = arith.constant 0 : index
    %c0_22 = arith.constant 0 : index
    %27 = vector.load %arg9[%c0_21, %c0_22] : memref<1x128xf32, #tpu.memory_space<vmem>>, vector<1x128xf32>
    %28 = vector.broadcast %27 : vector<1x128xf32> to vector<8x128xf32>
    %29 = arith.addf %26, %28 : vector<8x128xf32>
    %cst_23 = arith.constant dense<0xFF800000> : vector<8xf32>
    %30 = vector.multi_reduction <maximumf>, %29, %cst_23 [1] : vector<8x128xf32> to vector<8xf32>
    %31 = vector.shape_cast %30 : vector<8xf32> to vector<8x1xf32>
    %32 = vector.broadcast %31 : vector<8x1xf32> to vector<8x128xf32>
    %33 = arith.subf %29, %32 : vector<8x128xf32>
    %34 = math.exp %33 : vector<8x128xf32>
    %cst_24 = arith.constant dense<0.000000e+00> : vector<8xf32>
    %35 = vector.multi_reduction <add>, %34, %cst_24 [1] : vector<8x128xf32> to vector<8xf32>
    %36 = vector.shape_cast %35 : vector<8xf32> to vector<8x1xf32>
    %37 = math.log %36 : vector<8x1xf32>
    %38 = vector.broadcast %37 : vector<8x1xf32> to vector<8x128xf32>
    %39 = arith.subf %33, %38 : vector<8x128xf32>
    %c0_25 = arith.constant 0 : index
    %c0_26 = arith.constant 0 : index
    %40 = vector.load %arg10[%c0_25, %c0_26] : memref<8x128xf32, #tpu.memory_space<vmem>>, vector<8x128xf32>
    tpu.vector_store %arg10[%c0_25, %c0_26], %39 {strides = array<i32>} : memref<8x128xf32, #tpu.memory_space<vmem>>, vector<8x128xf32>,
    return
  }
  func.func @transform_0(%arg0: i32) -> (i32, i32) {
    %c0_i32 = arith.constant 0 : i32
    %c0_i32_0 = arith.constant 0 : i32
    return %arg0, %c0_i32 : i32, i32
  }
  func.func @transform_1(%arg0: i32) -> (i32, i32) {
    %c0_i32 = arith.constant 0 : i32
    %c0_i32_0 = arith.constant 0 : i32
    %c0_i32_1 = arith.constant 0 : i32
    return %c0_i32, %c0_i32_0 : i32, i32
  }
  func.func @transform_2(%arg0: i32) -> (i32, i32) {
    %c0_i32 = arith.constant 0 : i32
    %c0_i32_0 = arith.constant 0 : i32
    %c0_i32_1 = arith.constant 0 : i32
    return %c0_i32, %c0_i32_0 : i32, i32
  }
  func.func @transform_3(%arg0: i32) -> (i32, i32) {
    %c0_i32 = arith.constant 0 : i32
    %c0_i32_0 = arith.constant 0 : i32
    %c0_i32_1 = arith.constant 0 : i32
    return %c0_i32, %c0_i32_0 : i32, i32
  }
  func.func @transform_4(%arg0: i32) -> (i32, i32) {
    %c0_i32 = arith.constant 0 : i32
    %c0_i32_0 = arith.constant 0 : i32
    %c0_i32_1 = arith.constant 0 : i32
    return %c0_i32, %c0_i32_0 : i32, i32
  }
  func.func @transform_5(%arg0: i32) -> (i32, i32) {
    %c0_i32 = arith.constant 0 : i32
    %c0_i32_0 = arith.constant 0 : i32
    %c0_i32_1 = arith.constant 0 : i32
    return %c0_i32, %c0_i32_0 : i32, i32
  }
  func.func @transform_6(%arg0: i32) -> (i32, i32) {
    %c0_i32 = arith.constant 0 : i32
    %c0_i32_0 = arith.constant 0 : i32
    %c0_i32_1 = arith.constant 0 : i32
    return %c0_i32, %c0_i32_0 : i32, i32
  }
  func.func @transform_7(%arg0: i32) -> (i32, i32) {
    %c0_i32 = arith.constant 0 : i32
    %c0_i32_0 = arith.constant 0 : i32
    %c0_i32_1 = arith.constant 0 : i32
    return %c0_i32, %c0_i32_0 : i32, i32
  }
  func.func @transform_8(%arg0: i32) -> (i32, i32) {
    %c0_i32 = arith.constant 0 : i32
    %c0_i32_0 = arith.constant 0 : i32
    %c0_i32_1 = arith.constant 0 : i32
    return %c0_i32, %c0_i32_0 : i32, i32
  }
  func.func @transform_9(%arg0: i32) -> (i32, i32) {
    %c0_i32 = arith.constant 0 : i32
    %c0_i32_0 = arith.constant 0 : i32
    return %arg0, %c0_i32 : i32, i32
  }
}

</mosaic_0001>

<bundles_post_ra>
// kernel: linear_net_forward.1
= control target key start
LH: loop header
LB: loop body
LE: loop exit
PB: predicated region body
PF: predicated region fallthrough
CT: control target
= control target key end

     0   :  { %14 = vsyncpa [#allocation3], 0  ;;  %s1835_s0 = inlined_call_operand.vmem [shape: bf16[8,896], index: 0, kind: input, shape index: {}]   ;;  %s1836_s1 = inlined_call_operand.vmem [shape: bf16[896,128], index: 1, kind: input, shape index: {}]   ;;  %s1837_s2 = inlined_call_operand.vmem [shape: f32[1,128], index: 2, kind: input, shape index: {}]   ;;  %s1838_s3 = inlined_call_operand.vmem [shape: bf16[128,128], index: 3, kind: input, shape index: {}]   ;;  %s1839_s4 = inlined_call_operand.vmem [shape: f32[1,128], index: 4, kind: input, shape index: {}]   ;;  %s1840_s5 = inlined_call_operand.vmem [shape: bf16[128,128], index: 5, kind: input, shape index: {}]   ;;  %s1841_s6 = inlined_call_operand.vmem [shape: f32[1,128], index: 6, kind: input, shape index: {}]   ;;  %s1842_s7 = inlined_call_operand.hbm [shape: bf16[128,128], index: 7, kind: input, shape index: {}]   ;;  %s1843_s8 = inlined_call_operand.vmem [shape: f32[1,128], index: 8, kind: input, shape index: {}]   ;;  %s1844_s9 = inlined_call_operand.hbm [shape: f32[8,128], index: 9, kind: output, shape index: {}]  }
   0x1   :  { %15 = vsyncpa [#allocation4], 0  ;;  %s1475_s30 = smov [#allocation2]   ;;  %s1427_s13 = scalar_lea.hbm %s1842_s7, 1024 }
   0x2   :  { %s35_s10 = sshll.u32 %s1475_s30, 4  ;;  %p1428_p0 = scmp.ne.s32.totalorder %s1842_s7, %s1427_s13  ;;  %s36_s10 = int_to_ptr.vmem [resolvable:$true] %s35_s10 }
   0x3   :  { %p1431_p1 = scmp.lt.u32.totalorder %s1427_s13, %s1842_s7 }
   0x5   :  { %p1433_p2 = pnand %p1431_p1, %p1428_p0 }
   0x7   :  { %1436 = shalt.err (!%p1433_p2)
}
   0x8   :  { %s1437_s18 = scalar_lea.vmem %s36_s10, 1024  ;;  %p1442_p4 = scmp.lt.s32.totalorder %s36_s10, %s36_s10 }
   0x9   :  { %p1438_p3 = scmp.ne.s32.totalorder %s36_s10, %s1437_s18  ;;  %p1443_p5 = scmp.lt.s32.totalorder %s1437_s18, %s1437_s18 }
   0xb   :  { %p1444_p6 = por %p1443_p5, %p1442_p4 }
   0xd   :  { %p1445_p7 = pnand %p1444_p6, %p1438_p3 }
   0xf   :  { %1448 = shalt.err (!%p1445_p7)
}
  0x10   :  { %s1476_s19 = smov 64   ;;  %s1477_s20 = smov 4  }
  0x11   :  { %41 = dma.hbm_to_vmem [thread:$0]  %s1842_s7, 1024, %s36_s10, [#allocation3], %s1476_s19, %s1476_s19, %s1477_s20  }
  0x12   :  { %1471 = dma.done.wait [#allocation3], 1024  }
  0x13   :  { %1472 = vsyncadd [#allocation3], 4294966272  ;;  %v1336_v0 = vld [vmem:[%s1836_s1 + $0x40] sm:$0xff]   ;;  %v1340_v4 = vld [vmem:[%s1836_s1 + $0x48] sm:$0xff]   ;;  %v1478_v42 = vmov 0.0   ;;  %vm1479_vm0 = vmmov 0  }
  0x14   :  { %v1337_v1 = vld [vmem:[%s1836_s1] sm:$0xff]   ;;  %1148 = vmatprep.subr.bf16.mxu0 %v1336_v0  ;;  %v1341_v5 = vld [vmem:[%s1836_s1 + $0x8] sm:$0xff]   ;;  %v1344_v8 = vld [vmem:[%s1836_s1 + $0x50] sm:$0xff]  }
  0x15   :  { %v1338_v2 = vld [vmem:[%s1836_s1 + $0xc0] sm:$0xff]   ;;  %1149 = vmatpush3.bf16.msra.mxu0 %v1337_v1  ;;  %v1342_v6 = vld [vmem:[%s1836_s1 + $0xc8] sm:$0xff]   ;;  %v1345_v9 = vld [vmem:[%s1836_s1 + $0x10] sm:$0xff]  }
  0x16   :  { %v1339_v3 = vld [vmem:[%s1836_s1 + $0x80] sm:$0xff]   ;;  %1170 = vmatprep.subr.bf16.mxu1 %v1338_v2  ;;  %1150 = vmatprep.subr.bf16.mxu0 %v1340_v4  ;;  %v1343_v7 = vld [vmem:[%s1836_s1 + $0x88] sm:$0xff]   ;;  %v1346_v10 = vld [vmem:[%s1836_s1 + $0xd0] sm:$0xff]  }
  0x17   :  { %1171 = vmatpush3.bf16.msra.mxu1 %v1339_v3  ;;  %v1347_v11 = vld [vmem:[%s1836_s1 + $0x90] sm:$0xff]   ;;  %v1348_v12 = vld [vmem:[%s1836_s1 + $0x58] sm:$0xff]   ;;  %v1352_v16 = vld [vmem:[%s1836_s1 + $0x60] sm:$0xff]  }
  0x18   :  { %1172 = vmatprep.subr.bf16.mxu1 %v1342_v6  ;;  %v1349_v13 = vld [vmem:[%s1836_s1 + $0x18] sm:$0xff]   ;;  %v1353_v17 = vld [vmem:[%s1836_s1 + $0x20] sm:$0xff]   ;;  %v1356_v20 = vld [vmem:[%s1836_s1 + $0x68] sm:$0xff]  }
  0x19   :  { %1151 = vmatpush3.bf16.msra.mxu0 %v1341_v5  ;;  %v1350_v14 = vld [vmem:[%s1836_s1 + $0xd8] sm:$0xff]   ;;  %v1354_v18 = vld [vmem:[%s1836_s1 + $0xe0] sm:$0xff]   ;;  %v1357_v21 = vld [vmem:[%s1836_s1 + $0x28] sm:$0xff]  }
  0x1a   :  { %1152 = vmatprep.subr.bf16.mxu0 %v1344_v8  ;;  %v1351_v15 = vld [vmem:[%s1836_s1 + $0x98] sm:$0xff]   ;;  %v1355_v19 = vld [vmem:[%s1836_s1 + $0xa0] sm:$0xff]   ;;  %v1358_v22 = vld [vmem:[%s1836_s1 + $0xe8] sm:$0xff]  }
  0x1b   :  { %1173 = vmatpush3.bf16.msra.mxu1 %v1343_v7  ;;  %v1359_v23 = vld [vmem:[%s1836_s1 + $0xa8] sm:$0xff]   ;;  %v1360_v24 = vld [vmem:[%s1836_s1 + $0x70] sm:$0xff]   ;;  %v1364_v28 = vld [vmem:[%s1836_s1 + $0x78] sm:$0xff]  }
  0x1c   :  { %1174 = vmatprep.subr.bf16.mxu1 %v1346_v10  ;;  %v1361_v25 = vld [vmem:[%s1836_s1 + $0x30] sm:$0xff]   ;;  %v1365_v29 = vld [vmem:[%s1836_s1 + $0x38] sm:$0xff]   ;;  %v48_v31 = vld [vmem:[%s1835_s0] sm:$0xff] }
  0x1d   :  { %1153 = vmatpush3.bf16.msra.mxu0 %v1345_v9  ;;  %v1362_v26 = vld [vmem:[%s1836_s1 + $0xf0] sm:$0xff]   ;;  %v1366_v30 = vld [vmem:[%s1836_s1 + $0xf8] sm:$0xff]   ;;  %v1058_v32 = vcombine.low %v48_v31, %v48_v31  ;;  %v1059_v33 = vcombine.high %v48_v31, %v48_v31  ;;  %v1370_v35 = vld [vmem:[%s1836_s1 + $0x140] sm:$0xff]  }
  0x1e   :  { %1154 = vmatprep.subr.bf16.mxu0 %v1348_v12  ;;  %v1363_v27 = vld [vmem:[%s1836_s1 + $0xb0] sm:$0xff]   ;;  %v1369_v34 = vld [vmem:[%s1836_s1 + $0xb8] sm:$0xff]   ;;  %v49_v36 = vld [vmem:[%s1835_s0 + $0x8] sm:$0xff] }
  0x1f   :  { %1175 = vmatpush3.bf16.msra.mxu1 %v1347_v11  ;;  %564 = vmatprep.mubr.bf16.mxu0 %v1059_v33  ;;  %v1060_v37 = vcombine.low %v49_v36, %v49_v36  ;;  %v1061_v38 = vcombine.high %v49_v36, %v49_v36  ;;  %v1373_v39 = vld [vmem:[%s1836_s1 + $0x100] sm:$0xff]   ;;  %v1375_v41 = vld [vmem:[%s1836_s1 + $0x148] sm:$0xff]   ;;  %v1378_v45 = vld [vmem:[%s1836_s1 + $0x150] sm:$0xff]  }
  0x20   :  { %1176 = vmatprep.subr.bf16.mxu1 %v1350_v14  ;;  %v1374_v40 = vld [vmem:[%s1836_s1 + $0x180] sm:$0xff]   ;;  %v1376_v43 = vld [vmem:[%s1836_s1 + $0x108] sm:$0xff]   ;;  %v1379_v46 = vld [vmem:[%s1836_s1 + $0x110] sm:$0xff]  }
  0x21   :  { %1155 = vmatpush3.bf16.msra.mxu0 %v1349_v13  ;;  %604 = vmatprep.mubr.bf16.mxu1 %v1061_v38  ;;  %v1377_v44 = vld [vmem:[%s1836_s1 + $0x188] sm:$0xff]   ;;  %v1380_v47 = vld [vmem:[%s1836_s1 + $0x190] sm:$0xff]   ;;  %v1381_v48 = vld [vmem:[%s1836_s1 + $0x158] sm:$0xff]  }
  0x22   :  { %1156 = vmatprep.subr.bf16.mxu0 %v1352_v16  ;;  %v1382_v49 = vld [vmem:[%s1836_s1 + $0x118] sm:$0xff]   ;;  %v1384_v50 = vld [vmem:[%s1836_s1 + $0x160] sm:$0xff]   ;;  %v1387_v53 = vld [vmem:[%s1836_s1 + $0x168] sm:$0xff]  }
  0x23   :  { %1177 = vmatpush3.bf16.msra.mxu1 %v1351_v15  ;;  %v1383_v51 = vld [vmem:[%s1836_s1 + $0x198] sm:$0xff]   ;;  %v1385_v52 = vld [vmem:[%s1836_s1 + $0x120] sm:$0xff]   ;;  %v1388_v55 = vld [vmem:[%s1836_s1 + $0x128] sm:$0xff]  }
  0x24   :  { %1178 = vmatprep.subr.bf16.mxu1 %v1354_v18  ;;  %v1386_v54 = vld [vmem:[%s1836_s1 + $0x1a0] sm:$0xff]   ;;  %v1390_v56 = vld [vmem:[%s1836_s1 + $0x170] sm:$0xff]   ;;  %v1389_v57 = vld [vmem:[%s1836_s1 + $0x1a8] sm:$0xff]  }
  0x25   :  { %1157 = vmatpush3.bf16.msra.mxu0 %v1353_v17  ;;  %v1391_v58 = vld [vmem:[%s1836_s1 + $0x130] sm:$0xff]   ;;  %v1393_v62 = vld [vmem:[%s1836_s1 + $0x178] sm:$0xff]   ;;  %v1399_v3 = vld [vmem:[%s1838_s3] sm:$0xff]  }
  0x26   :  { %1158 = vmatprep.subr.bf16.mxu0 %v1356_v20  ;;  %v50_v59 = vld [vmem:[%s1835_s0 + $0x10] sm:$0xff]  ;;  %v1394_v63 = vld [vmem:[%s1836_s1 + $0x138] sm:$0xff]   ;;  %v1400_v4 = vld [vmem:[%s1838_s3 + $0x8] sm:$0xff]  }
  0x27   :  { %1179 = vmatpush3.bf16.msra.mxu1 %v1355_v19  ;;  %v1392_v60 = vld [vmem:[%s1836_s1 + $0x1b0] sm:$0xff]   ;;  %v1063_v61 = vcombine.high %v50_v59, %v50_v59  ;;  %v1397_v0 = vld [vmem:[%s1836_s1 + $0x1b8] sm:$0xff]   ;;  %v1062_v1 = vcombine.low %v50_v59, %v50_v59  ;;  %v1403_v7 = vld [vmem:[%s1838_s3 + $0x20] sm:$0xff]  }
  0x28   :  { %1180 = vmatprep.subr.bf16.mxu1 %v1358_v22  ;;  %v1398_v2 = vld [vmem:[%s1835_s0 + $0x18] ss:$0 sps:$4 sm:$0xff]   ;;  %v1401_v5 = vld [vmem:[%s1838_s3 + $0x10] sm:$0xff]   ;;  %v1404_v8 = vld [vmem:[%s1838_s3 + $0x28] sm:$0xff]  }
  0x29   :  { %1159 = vmatpush3.bf16.msra.mxu0 %v1357_v21  ;;  %v1402_v6 = vld [vmem:[%s1838_s3 + $0x18] sm:$0xff]   ;;  %v1405_v9 = vld [vmem:[%s1838_s3 + $0x30] sm:$0xff]   ;;  %v1407_v11 = vld [vmem:[%s1840_s5] sm:$0xff]  }
  0x2a   :  { %1160 = vmatprep.subr.bf16.mxu0 %v1360_v24  ;;  %v1406_v10 = vld [vmem:[%s1838_s3 + $0x38] sm:$0xff]   ;;  %v1408_v12 = vld [vmem:[%s1840_s5 + $0x8] sm:$0xff]   ;;  %v1409_v13 = vld [vmem:[%s1840_s5 + $0x10] sm:$0xff]  }
  0x2b   :  { %1181 = vmatpush3.bf16.msra.mxu1 %v1359_v23  ;;  %v1410_v14 = vld [vmem:[%s1840_s5 + $0x18] sm:$0xff]   ;;  %v1411_v15 = vld [vmem:[%s1840_s5 + $0x20] sm:$0xff]   ;;  %v1412_v16 = vld [vmem:[%s1840_s5 + $0x28] sm:$0xff]  }
  0x2c   :  { %1182 = vmatprep.subr.bf16.mxu1 %v1362_v26  ;;  %v1057_v18 = vld [vmem:[%s1837_s2] ss:$0 sm:$0xff] }
  0x2d   :  { %1161 = vmatpush3.bf16.msra.mxu0 %v1361_v25 }
  0x2e   :  { %1162 = vmatprep.subr.bf16.mxu0 %v1364_v28 }
  0x2f   :  { %1183 = vmatpush3.bf16.msra.mxu1 %v1363_v27 }
  0x30   :  { %1184 = vmatprep.subr.bf16.mxu1 %v1366_v30 }
  0x31   :  { %1163 = vmatpush3.bf16.msra.mxu0 %v1365_v29 }
  0x32   :  { %1192 = vmatprep.subr.bf16.mxu0 %v1370_v35 }
  0x33   :  { %1185 = vmatpush3.bf16.msra.mxu1 %v1369_v34 }
  0x34   :  { %565 = vmatmul.mubr.bf16.vlgmr.msra.gmra.mrb[0].mxu0 %v1058_v32  ;;  %1250 = vmatprep.subr.bf16.mxu1 %v1478_v42 }
  0x35   :  { %1193 = vmatpush3.bf16.msra.mxu0 %v1373_v39  ;;  %644 = vmatprep.mubr.bf16.mxu0 %v1063_v61  ;;  %v1422_v61 = vld [vmem:[#allocation2 + $0x38] sm:$0xff]  }
  0x36   :  { %605 = vmatmul.mubr.bf16.vlgmr.msra.gmra.mrb[0].mxu1 %v1060_v37  ;;  %1194 = vmatprep.subr.bf16.mxu0 %v1375_v41 }
  0x37   :  { %1251 = vmatpush3.bf16.msra.mxu1 %v1374_v40  ;;  %1266 = vmatprep.mubr.msk.bf16.mxu1 %vm1479_vm0, %v1478_v42 }
  0x38   :  { %1252 = vmatprep.subr.bf16.mxu1 %v1478_v42 }
  0x39   :  { %1195 = vmatpush3.bf16.msra.mxu0 %v1376_v43 }
  0x3a   :  { %1196 = vmatprep.subr.bf16.mxu0 %v1378_v45  ;;  %v1414_v45 = vld [vmem:[%s1840_s5 + $0x38] sm:$0xff]  }
  0x3b   :  { %1253 = vmatpush3.bf16.msra.mxu1 %v1377_v44  ;;  %v1413_v44 = vld [vmem:[%s1840_s5 + $0x30] sm:$0xff]  }
  0x3c   :  { %1254 = vmatprep.subr.bf16.mxu1 %v1478_v42 }
  0x3d   :  { %1197 = vmatpush3.bf16.msra.mxu0 %v1379_v46  ;;  %v1415_v46 = vld [vmem:[#allocation2] sm:$0xff]  }
  0x3e   :  { %1198 = vmatprep.subr.bf16.mxu0 %v1381_v48  ;;  %v1417_v48 = vld [vmem:[#allocation2 + $0x10] sm:$0xff]  }
  0x3f   :  { %1255 = vmatpush3.bf16.msra.mxu1 %v1380_v47  ;;  %v1416_v47 = vld [vmem:[#allocation2 + $0x8] sm:$0xff]  }
  0x40   :  { %1256 = vmatprep.subr.bf16.mxu1 %v1478_v42 }
  0x41   :  { %1199 = vmatpush3.bf16.msra.mxu0 %v1382_v49  ;;  %v1418_v49 = vld [vmem:[#allocation2 + $0x18] sm:$0xff]  }
  0x42   :  { %1200 = vmatprep.subr.bf16.mxu0 %v1384_v50  ;;  %v1419_v50 = vld [vmem:[#allocation2 + $0x20] sm:$0xff]  }
  0x43   :  { %1257 = vmatpush3.bf16.msra.mxu1 %v1383_v51  ;;  %v1420_v51 = vld [vmem:[#allocation2 + $0x28] sm:$0xff]  }
  0x44   :  { %1258 = vmatprep.subr.bf16.mxu1 %v1478_v42 }
  0x45   :  { %1201 = vmatpush3.bf16.msra.mxu0 %v1385_v52  ;;  %v1121_v52 = vld [vmem:[%s1839_s4] ss:$0 sm:$0xff] }
  0x46   :  { %1202 = vmatprep.subr.bf16.mxu0 %v1387_v53 }
  0x47   :  { %1259 = vmatpush3.bf16.msra.mxu1 %v1386_v54 }
  0x48   :  { %1260 = vmatprep.subr.bf16.mxu1 %v1478_v42 }
  0x49   :  { %1203 = vmatpush3.bf16.msra.mxu0 %v1388_v55 }
  0x4a   :  { %1204 = vmatprep.subr.bf16.mxu0 %v1390_v56 }
  0x4b   :  { %1261 = vmatpush3.bf16.msra.mxu1 %v1389_v57 }
  0x4c   :  { %1262 = vmatprep.subr.bf16.mxu1 %v1478_v42 }
  0x4d   :  { %1205 = vmatpush3.bf16.msra.mxu0 %v1391_v58 }
  0x4e   :  { %1206 = vmatprep.subr.bf16.mxu0 %v1393_v62  ;;  %v1130_v62 = vld [vmem:[%s1841_s6] ss:$0 sm:$0xff]  ;;  %s1480_s6 = smov [#allocation5]  }
  0x4f   :  { %1263 = vmatpush3.bf16.msra.mxu1 %v1392_v60  ;;  %v1421_v60 = vld [vmem:[#allocation2 + $0x30] sm:$0xff]   ;;  %s1048_s21 = sshll.u32 %s1480_s6, 4  ;;  %s1049_s21 = int_to_ptr.vmem [resolvable:$true] %s1048_s21 }
  0x50   :  { %1264 = vmatprep.subr.bf16.mxu1 %v1478_v42  ;;  %p1454_p9 = scmp.lt.s32.totalorder %s1049_s21, %s1049_s21 }
  0x51   :  { %1207 = vmatpush3.bf16.msra.mxu0 %v1394_v63 }
  0x52   :  { %1270 = vmatprep.subr.bf16.mxu0 %v1478_v42 }
  0x53   :  { %1265 = vmatpush3.bf16.msra.mxu1 %v1397_v0 }
  0x54   :  { %645 = vmatmul.mubr.bf16.vlgmr.msra.gmra.mrb[4].mxu0 %v1062_v1  ;;  %1290 = vmatprep.subr.bf16.mxu1 %v1478_v42 }
  0x55   :  { %1286 = vmatprep.mubr.msk.bf16.mxu0 %vm1479_vm0, %v1478_v42  ;;  %1271 = vmatpush3.bf16.msra.mxu0 %v1399_v3 }
  0x56   :  { %1267 = vmatmul.mubr.bf16.vlgmr.msra.gmra.mrb[4].mxu1 %v1398_v2  ;;  %1272 = vmatprep.subr.bf16.mxu0 %v1478_v42 }
  0x57   :  { %1306 = vmatprep.mubr.msk.bf16.mxu1 %vm1479_vm0, %v1478_v42  ;;  %1291 = vmatpush3.bf16.msra.mxu1 %v1407_v11 }
  0x58   :  { %1292 = vmatprep.subr.bf16.mxu1 %v1478_v42 }
  0x59   :  { %1273 = vmatpush3.bf16.msra.mxu0 %v1400_v4 }
  0x5a   :  { %1274 = vmatprep.subr.bf16.mxu0 %v1478_v42 }
  0x5b   :  { %1293 = vmatpush3.bf16.msra.mxu1 %v1408_v12 }
  0x5c   :  { %1294 = vmatprep.subr.bf16.mxu1 %v1478_v42 }
  0x5d   :  { %1275 = vmatpush3.bf16.msra.mxu0 %v1401_v5 }
  0x5e   :  { %1276 = vmatprep.subr.bf16.mxu0 %v1478_v42 }
  0x5f   :  { %1295 = vmatpush3.bf16.msra.mxu1 %v1409_v13 }
  0x60   :  { %1296 = vmatprep.subr.bf16.mxu1 %v1478_v42 }
  0x61   :  { %1277 = vmatpush3.bf16.msra.mxu0 %v1402_v6  ;;  %v1139_v6 = vld [vmem:[%s1843_s8] ss:$0 sm:$0xff]  ;;  %s1449_s8 = scalar_lea.vmem %s1049_s21, 128 }
  0x62   :  { %1278 = vmatprep.subr.bf16.mxu0 %v1478_v42  ;;  %p1450_p8 = scmp.ne.s32.totalorder %s1049_s21, %s1449_s8  ;;  %p1455_p10 = scmp.lt.s32.totalorder %s1449_s8, %s1449_s8 }
  0x63   :  { %1297 = vmatpush3.bf16.msra.mxu1 %v1410_v14 }
  0x64   :  { %1298 = vmatprep.subr.bf16.mxu1 %v1478_v42  ;;  %p1456_p11 = por %p1455_p10, %p1454_p9 }
  0x65   :  { %1279 = vmatpush3.bf16.msra.mxu0 %v1403_v7 }
  0x66   :  { %1280 = vmatprep.subr.bf16.mxu0 %v1478_v42  ;;  %p1457_p12 = pnand %p1456_p11, %p1450_p8 }
  0x67   :  { %1299 = vmatpush3.bf16.msra.mxu1 %v1411_v15 }
  0x68   :  { %1300 = vmatprep.subr.bf16.mxu1 %v1478_v42 }
  0x69   :  { %1281 = vmatpush3.bf16.msra.mxu0 %v1404_v8 }
  0x6a   :  { %1282 = vmatprep.subr.bf16.mxu0 %v1478_v42 }
  0x6b   :  { %1301 = vmatpush3.bf16.msra.mxu1 %v1412_v16 }
  0x6c   :  { %1302 = vmatprep.subr.bf16.mxu1 %v1478_v42 }
  0x6d   :  { %1283 = vmatpush3.bf16.msra.mxu0 %v1405_v9 }
  0x6e   :  { %1284 = vmatprep.subr.bf16.mxu0 %v1478_v42 }
  0x6f   :  { %1303 = vmatpush3.bf16.msra.mxu1 %v1413_v44 }
  0x70   :  { %1304 = vmatprep.subr.bf16.mxu1 %v1478_v42 }
  0x71   :  { %1285 = vmatpush3.bf16.msra.mxu0 %v1406_v10 }
  0x72   :  { %1310 = vmatprep.subr.bf16.mxu0 %v1478_v42 }
  0x73   :  { %1305 = vmatpush3.bf16.msra.mxu1 %v1414_v45 }
 0x107   :  { %v1164_v17 = vpop.f32.mrb[0].mxu0 }
 0x108   :  { %v1165_v19 = vpop.f32.mrb[1].mxu0 }
 0x109   :  { %v1166_v20 = vadd.f32 %v1165_v19, %v1164_v17  ;;  %v1167_v21 = vpop.f32.mrb[2].mxu0  ;;  %v1186_v22 = vpop.f32.mrb[0].mxu1 }
 0x10a   :  { %v1168_v23 = vpop.f32.mrb[3].mxu0  ;;  %v1187_v24 = vpop.f32.mrb[1].mxu1 }
 0x10b   :  { %v567_v25 = vadd.f32 %v1166_v20, %v1057_v18  ;;  %v1188_v26 = vadd.f32 %v1187_v24, %v1186_v22  ;;  %v1189_v27 = vpop.f32.mrb[2].mxu1 }
 0x10c   :  { %v1190_v28 = vpop.f32.mrb[3].mxu1 }
 0x10d   :  { %v607_v29 = vadd.f32 %v1188_v26, %v567_v25 }
 0x127   :  { %v1208_v30 = vpop.f32.mrb[4].mxu0 }
 0x128   :  { %v1209_v31 = vpop.f32.mrb[5].mxu0 }
 0x129   :  { %v1210_v32 = vadd.f32 %v1209_v31, %v1208_v30  ;;  %v1211_v33 = vpop.f32.mrb[6].mxu0  ;;  %v686_v34 = vpop.f32.mrb[4].mxu1 }
 0x12a   :  { %v1212_v35 = vpop.f32.mrb[7].mxu0  ;;  %v1268_v36 = vpop.f32.mrb[5].mxu1 }
 0x12b   :  { %v647_v37 = vadd.f32 %v1210_v32, %v607_v29  ;;  %v689_v38 = vpop.f32.mrb[6].mxu1 }
 0x12c   :  { %v1269_v39 = vpop.f32.mrb[7].mxu1 }
 0x12d   :  { %v687_v40 = vadd.f32 %v686_v34, %v647_v37 }
 0x12f   :  { %v692_v41 = vmax.f32 %v687_v40, 0.0 }
 0x131   :  { %v693_v43 = vpack.c.bf16 %v692_v41, %v692_v41 }
 0x133   :  { %1287 = vmatmul.mubr.bf16.vlgmr.msra.gmra.mrb[8].mxu0 %v693_v43 }
 0x134   :  { %1326 = vmatprep.mubr.msk.bf16.mxu0 %vm1479_vm0, %v1478_v42  ;;  %1311 = vmatpush3.bf16.msra.mxu0 %v1415_v46 }
 0x135   :  { %1312 = vmatprep.subr.bf16.mxu0 %v1478_v42 }
 0x138   :  { %1313 = vmatpush3.bf16.msra.mxu0 %v1416_v47 }
 0x139   :  { %1314 = vmatprep.subr.bf16.mxu0 %v1478_v42 }
 0x13c   :  { %1315 = vmatpush3.bf16.msra.mxu0 %v1417_v48 }
 0x13d   :  { %1316 = vmatprep.subr.bf16.mxu0 %v1478_v42 }
 0x140   :  { %1317 = vmatpush3.bf16.msra.mxu0 %v1418_v49 }
 0x141   :  { %1318 = vmatprep.subr.bf16.mxu0 %v1478_v42 }
 0x144   :  { %1319 = vmatpush3.bf16.msra.mxu0 %v1419_v50 }
 0x145   :  { %1320 = vmatprep.subr.bf16.mxu0 %v1478_v42 }
 0x148   :  { %1321 = vmatpush3.bf16.msra.mxu0 %v1420_v51 }
 0x149   :  { %1322 = vmatprep.subr.bf16.mxu0 %v1478_v42 }
 0x14c   :  { %1323 = vmatpush3.bf16.msra.mxu0 %v1421_v60 }
 0x14d   :  { %1324 = vmatprep.subr.bf16.mxu0 %v1478_v42 }
 0x150   :  { %1325 = vmatpush3.bf16.msra.mxu0 %v1422_v61 }
 0x206   :  { %v799_v53 = vpop.f32.mrb[8].mxu0 }
 0x207   :  { %v800_v54 = vadd.f32 %v1121_v52, %v799_v53  ;;  %v1288_v55 = vpop.f32.mrb[9].mxu0 }
 0x208   :  { %v802_v56 = vpop.f32.mrb[10].mxu0 }
 0x209   :  { %v805_v57 = vmax.f32 %v800_v54, 0.0  ;;  %v1289_v58 = vpop.f32.mrb[11].mxu0 }
 0x20b   :  { %v806_v59 = vpack.c.bf16 %v805_v57, %v805_v57 }
 0x20d   :  { %1307 = vmatmul.mubr.bf16.vlgmr.msra.gmra.mrb[8].mxu1 %v806_v59 }
 0x2e0   :  { %v912_v63 = vpop.f32.mrb[8].mxu1 }
 0x2e1   :  { %v913_v0 = vadd.f32 %v1130_v62, %v912_v63  ;;  %v1308_v1 = vpop.f32.mrb[9].mxu1 }
 0x2e2   :  { %v915_v2 = vpop.f32.mrb[10].mxu1 }
 0x2e3   :  { %v918_v3 = vmax.f32 %v913_v0, 0.0  ;;  %v1309_v4 = vpop.f32.mrb[11].mxu1 }
 0x2e5   :  { %v919_v5 = vpack.c.bf16 %v918_v3, %v918_v3 }
 0x2e7   :  { %1327 = vmatmul.mubr.bf16.vlgmr.msra.gmra.mrb[12].mxu0 %v919_v5 }
 0x3ba   :  { %v1025_v7 = vpop.f32.mrb[12].mxu0 }
 0x3bb   :  { %v1026_v42 = vadd.f32 %v1139_v6, %v1025_v7  ;;  %v1328_v8 = vpop.f32.mrb[13].mxu0 }
 0x3bc   :  { %v1028_v9 = vpop.f32.mrb[14].mxu0 }
 0x3bd   :  { %1031 = vmax.xlane.f32.xlu0 %v1026_v42  ;;  %v1329_v10 = vpop.f32.mrb[15].mxu0 }
 0x44a   :  { %v1032_v11 = vpop.xlane.xlu0 %1031 }
 0x44b   :  { %v1033_v12 = vsub.f32 %v1026_v42, %v1032_v11 }
 0x44d   :  { %v1034_v13 = vmul.f32 1.442695, %v1033_v12 }
 0x44f   :  { %1423 = vpow2.f32 %v1034_v13 }
 0x459   :  { %v1424_v14 = vpop.eup %1423 }
 0x45a   :  { %1036 = vadd.xlane.f32.xlu0 %v1424_v14 }
 0x4e7   :  { %v1037_v15 = vpop.xlane.xlu0 %1036 }
 0x4e8   :  { %1425 = vlog2.f32 %v1037_v15 }
 0x4f2   :  { %v1426_v16 = vpop.eup %1425 }
 0x4f3   :  { %v1039_v17 = vmul.f32 0.6931472, %v1426_v16 }
 0x4f5   :  { %v1040_v18 = vsub.f32 %v1033_v12, %v1039_v17 }
 0x4f7   :  { %1041 = vst [vmem:[#allocation5] sm:$0xff] %v1040_v18 }
 0x4f8   :  { %1460 = shalt.err (!%p1457_p12)
}
 0x4f9   :  { %s1461_s24 = scalar_lea.hbm %s1844_s9, 128 }
 0x4fa   :  { %p1462_p13 = scmp.ne.s32.totalorder %s1844_s9, %s1461_s24  ;;  %p1465_p0 = scmp.lt.u32.totalorder %s1461_s24, %s1844_s9 }
 0x4fc   :  { %p1467_p1 = pnand %p1465_p0, %p1462_p13 }
 0x4fe   :  { %1470 = shalt.err (!%p1467_p1)
}
 0x4ff   :  { %1051 = dma.vmem_to_hbm [thread:$0]  %s1049_s21, 128, %s1844_s9, [#allocation4]  }
 0x500   :  { %1473 = dma.done.wait [#allocation4], 128  }
 0x501   :  { %1474 = vsyncadd [#allocation4], 4294967168 }
 0x502   :  { %1055 = vsyncpa [#allocation3], 1 }
 0x503   :  { %1056 = vsyncpa [#allocation4], 1 }

</bundles_post_ra>
